<compile_context>
chip_gen: v5e
topology: v5e:2x2
jax: 0.10.0
libtpu: 0.0.40
codegen_flags: <defaults>
</compile_context>

<pallas_src>
import math

import jax
import jax.numpy as jnp
from jax.experimental import pallas as pl
from jax.experimental.pallas import tpu as pltpu

# --------------------------- model dims (small, synthetic) -------------------
B = 2          # batch
L = 8          # sequence length
D = 32         # d_model
H = 4          # number of heads
DH = D // H    # head dim
DFF = 4 * D    # d_ff (default 4 * d_model)


# ------------------------------- fused kernel --------------------------------
def encoder_layer_kernel(x_ref, wqkv_ref, wo_ref, w1_ref, w2_ref,
                         xout_ref, attn_ref, y_ref):
    """QKV proj -> multi-head softmax attention -> out proj + residual -> FFN.

    x_ref    : (B, L, D)     activations (entire problem resident in VMEM)
    wqkv_ref : (D, 3*D)      [wq * (1/sqrt(DH)) | wk | wv]  (scale pre-folded)
    wo_ref   : (D, D)        attention output projection
    w1_ref   : (D, DFF)      conv1.weight[:, :, 0].T  (kernel_size=1 conv == matmul)
    w2_ref   : (DFF, D)      conv2.weight[:, :, 0].T
    xout_ref : (B, L, D)     x + attention(x)   (what the module returns)
    attn_ref : (H, B, L, L)  softmax attention weights (transposed outside)
    y_ref    : (B, L, D)     conv2(relu(conv1(x_out)))  (dead in module's return)
    """
    x3 = x_ref[...]                                # (B, L, D)
    x2 = x3.reshape(B * L, D)                      # leading-dim merge (layout-trivial)

    # Fused QKV projection: one MXU push with 96 output lanes instead of three.
    qkv = jnp.dot(x2, wqkv_ref[...], preferred_element_type=jnp.float32)  # (B*L, 3D)
    q = qkv[:, 0 * D:1 * D].reshape(B, L, D)
    k = qkv[:, 1 * D:2 * D].reshape(B, L, D)
    v = qkv[:, 2 * D:3 * D].reshape(B, L, D)

    # Residual folded into the accumulator.  Per-head output-projection rows
    # (sublane-aligned DH-row slices of Wo) avoid a lane-axis concatenate.
    acc = x2                                       # (B*L, D), float32
    for h in range(H):                             # static unroll, H = 4
        sl = slice(h * DH, (h + 1) * DH)
        qh = q[:, :, sl]                           # (B, L, DH)
        kh = k[:, :, sl]
        vh = v[:, :, sl]
        # scores; 1/sqrt(DH) already folded into the Q-projection weights
        s = jnp.einsum('bqd,bkd->bqk', qh, kh,
                       preferred_element_type=jnp.float32)          # (B, L, L)
        m = jnp.max(s, axis=-1, keepdims=True)
        p = jnp.exp(s - m)
        inv = pl.reciprocal(jnp.sum(p, axis=-1, keepdims=True), approx=True)  # EUP
        a = p * inv                                                  # (B, L, L)
        attn_ref[h] = a.astype(attn_ref.dtype)                       # 1 store / head
        ctx = jnp.einsum('bqk,bkd->bqd', a, vh,
                         preferred_element_type=jnp.float32)         # (B, L, DH)
        acc = acc + jnp.dot(ctx.reshape(B * L, DH), wo_ref[sl, :],
                            preferred_element_type=jnp.float32)

    x_out = acc                                    # (B*L, D) = x + attn_out
    xout_ref[...] = x_out.reshape(B, L, D).astype(xout_ref.dtype)

    # FFN branch (conv1 -> ReLU -> conv2), fused while x_out is VMEM-resident.
    # Its result is unused by the module's return; dropout is identity (eval).
    h1 = jnp.maximum(
        jnp.dot(x_out, w1_ref[...], preferred_element_type=jnp.float32), 0.0)
    y = jnp.dot(h1, w2_ref[...], preferred_element_type=jnp.float32)
    y_ref[...] = y.reshape(B, L, D).astype(y_ref.dtype)


# -------------------------------- wrapper ------------------------------------
@jax.jit
def encoder_layer_forward(x, wqkv, wo, w1, w2):
    """Returns (x_out, attn, y). The module itself returns (x_out, attn)."""
    x_out, attn_hb, y = pl.pallas_call(
        encoder_layer_kernel,
        out_shape=(
            jax.ShapeDtypeStruct((B, L, D), jnp.float32),
            jax.ShapeDtypeStruct((H, B, L, L), jnp.float32),
            jax.ShapeDtypeStruct((B, L, D), jnp.float32),
        ),
        grid=(1,),  # whole problem (~50 KB) in one step: no per-step overhead
        in_specs=[
            pl.BlockSpec((B, L, D), lambda i: (0, 0, 0)),
            pl.BlockSpec((D, 3 * D), lambda i: (0, 0)),
            pl.BlockSpec((D, D), lambda i: (0, 0)),
            pl.BlockSpec((D, DFF), lambda i: (0, 0)),
            pl.BlockSpec((DFF, D), lambda i: (0, 0)),
        ],
        out_specs=(
            pl.BlockSpec((B, L, D), lambda i: (0, 0, 0)),
            pl.BlockSpec((H, B, L, L), lambda i: (0, 0, 0, 0)),
            pl.BlockSpec((B, L, D), lambda i: (0, 0, 0)),
        ),
        compiler_params=pltpu.CompilerParams(
            dimension_semantics=("arbitrary",)),
    )(x, wqkv, wo, w1, w2)
    attn = jnp.transpose(attn_hb, (1, 0, 2, 3))    # (B, H, L, L), cheap XLA op
    return x_out, attn, y


def prepare_kernel_weights(params):
    """One-time weight transform: fold softmax scale into Wq and fuse QKV."""
    scale = 1.0 / math.sqrt(DH)
    wqkv = jnp.concatenate(
        [params["wq"] * scale, params["wk"], params["wv"]], axis=1)  # (D, 3D)
    return wqkv, params["wo"], params["w1"], params["w2"]


def reference_forward(x, params):
    """Pure-JAX reference (unfused, unscaled weights) for correctness checks."""
    wq, wk, wv, wo, w1, w2 = (params[n] for n in ("wq", "wk", "wv", "wo", "w1", "w2"))
    q = x @ wq
    k = x @ wk
    v = x @ wv
    qh = q.reshape(B, L, H, DH).transpose(0, 2, 1, 3)
    kh = k.reshape(B, L, H, DH).transpose(0, 2, 1, 3)
    vh = v.reshape(B, L, H, DH).transpose(0, 2, 1, 3)
    s = jnp.einsum("bhld,bhmd->bhlm", qh, kh) / math.sqrt(DH)
    a = jax.nn.softmax(s, axis=-1)
    ctx = jnp.einsum("bhlm,bhmd->bhld", a, vh).transpose(0, 2, 1, 3).reshape(B, L, D)
    x_out = x + ctx @ wo
    y = jnp.maximum(x_out @ w1, 0.0) @ w2
    return x_out, a, y


# --------------------------------- main ---------------------------------------
if __name__ == "__main__":
    key = jax.random.PRNGKey(0)
    ks = jax.random.split(key, 7)

    # Synthetic parameters matching the module's shapes:
    #   attention: 4 x (D, D) projections
    #   conv1.weight (DFF, D, 1) -> stored transposed as (D, DFF)
    #   conv2.weight (D, DFF, 1) -> stored transposed as (DFF, D)
    params = {
        "wq": jax.random.normal(ks[0], (D, D), jnp.float32) / math.sqrt(D),
        "wk": jax.random.normal(ks[1], (D, D), jnp.float32) / math.sqrt(D),
        "wv": jax.random.normal(ks[2], (D, D), jnp.float32) / math.sqrt(D),
        "wo": jax.random.normal(ks[3], (D, D), jnp.float32) / math.sqrt(D),
        "w1": jax.random.normal(ks[4], (D, DFF), jnp.float32) / math.sqrt(D),
        "w2": jax.random.normal(ks[5], (DFF, D), jnp.float32) / math.sqrt(DFF),
    }
    x = jax.random.normal(ks[6], (B, L, D), jnp.float32)

    wqkv, wo, w1, w2 = prepare_kernel_weights(params)
    x_out, attn, y = encoder_layer_forward(x, wqkv, wo, w1, w2)
    jax.block_until_ready((x_out, attn, y))

    # Sanity check against the pure-JAX reference.  Tolerance accounts for the
    # EUP approximate reciprocal in the softmax denominator.
    x_ref, a_ref, y_ref = reference_forward(x, params)
    assert jnp.allclose(x_out, x_ref, atol=2e-2, rtol=2e-2)
    assert jnp.allclose(attn, a_ref, atol=2e-2, rtol=2e-2)
    assert jnp.allclose(y, y_ref, atol=2e-2, rtol=2e-2)

    # TODO(synk): nn.Dropout is treated as eval-mode identity (no RNG mask).
    print("KERNEL_OK")
</pallas_src>

<mosaic_0001>
module attributes {stable_mosaic.version = 11 : i64} {
  func.func @encoder_layer_kernel(%arg0: i32, %arg1: memref<2x8x32xf32, #tpu.memory_space<vmem>>, %arg2: memref<32x96xf32, #tpu.memory_space<vmem>>, %arg3: memref<32x32xf32, #tpu.memory_space<vmem>>, %arg4: memref<32x128xf32, #tpu.memory_space<vmem>>, %arg5: memref<128x32xf32, #tpu.memory_space<vmem>>, %arg6: memref<2x8x32xf32, #tpu.memory_space<vmem>>, %arg7: memref<4x2x8x8xf32, #tpu.memory_space<vmem>>, %arg8: memref<2x8x32xf32, #tpu.memory_space<vmem>>) attributes {dimension_semantics = [#tpu.dimension_semantics<arbitrary>], iteration_bounds = array<i64: 1>, scalar_prefetch = 0 : i64, scratch_operands = 0 : i64, tpu.core_type = #tpu.core_type<tc>, window_params = [{pipeline_mode = #tpu.pipeline_mode<synchronous>, transform_indices = @transform_0, window_bounds = array<i64: 2, 8, 32>}, {pipeline_mode = #tpu.pipeline_mode<synchronous>, transform_indices = @transform_1, window_bounds = array<i64: 32, 96>}, {pipeline_mode = #tpu.pipeline_mode<synchronous>, transform_indices = @transform_2, window_bounds = array<i64: 32, 32>}, {pipeline_mode = #tpu.pipeline_mode<synchronous>, transform_indices = @transform_3, window_bounds = array<i64: 32, 128>}, {pipeline_mode = #tpu.pipeline_mode<synchronous>, transform_indices = @transform_4, window_bounds = array<i64: 128, 32>}, {pipeline_mode = #tpu.pipeline_mode<synchronous>, transform_indices = @transform_5, window_bounds = array<i64: 2, 8, 32>}, {pipeline_mode = #tpu.pipeline_mode<synchronous>, transform_indices = @transform_6, window_bounds = array<i64: 4, 2, 8, 8>}, {pipeline_mode = #tpu.pipeline_mode<synchronous>, transform_indices = @transform_7, window_bounds = array<i64: 2, 8, 32>}]} {
    %c0 = arith.constant 0 : index
    %c0_0 = arith.constant 0 : index
    %c0_1 = arith.constant 0 : index
    %0 = vector.load %arg1[%c0, %c0_0, %c0_1] : memref<2x8x32xf32, #tpu.memory_space<vmem>>, vector<2x8x32xf32>
    %1 = vector.shape_cast %0 : vector<2x8x32xf32> to vector<16x32xf32>
    %c0_2 = arith.constant 0 : index
    %c0_3 = arith.constant 0 : index
    %2 = vector.load %arg2[%c0_2, %c0_3] : memref<32x96xf32, #tpu.memory_space<vmem>>, vector<32x96xf32>
    %cst = arith.constant dense<0.000000e+00> : vector<16x96xf32>
    %3 = tpu.matmul %1, %2, %cst {dimension_numbers = #tpu.dot_dimension_numbers<[1], [0], [0], [1], [0, 0, 1, 1], [], []>} : vector<16x32xf32>, vector<32x96xf32>, vector<16x96xf32> -> vector<16x96xf32>
    %4 = vector.extract_strided_slice %3 {offsets = [0, 0], sizes = [16, 32], strides = [1, 1]} : vector<16x96xf32> to vector<16x32xf32>
    %5 = vector.shape_cast %4 : vector<16x32xf32> to vector<2x8x32xf32>
    %6 = vector.extract_strided_slice %3 {offsets = [0, 32], sizes = [16, 32], strides = [1, 1]} : vector<16x96xf32> to vector<16x32xf32>
    %7 = vector.shape_cast %6 : vector<16x32xf32> to vector<2x8x32xf32>
    %8 = vector.extract_strided_slice %3 {offsets = [0, 64], sizes = [16, 32], strides = [1, 1]} : vector<16x96xf32> to vector<16x32xf32>
    %9 = vector.shape_cast %8 : vector<16x32xf32> to vector<2x8x32xf32>
    %10 = vector.extract_strided_slice %5 {offsets = [0, 0, 0], sizes = [2, 8, 8], strides = [1, 1, 1]} : vector<2x8x32xf32> to vector<2x8x8xf32>
    %11 = vector.extract_strided_slice %7 {offsets = [0, 0, 0], sizes = [2, 8, 8], strides = [1, 1, 1]} : vector<2x8x32xf32> to vector<2x8x8xf32>
    %12 = vector.extract_strided_slice %9 {offsets = [0, 0, 0], sizes = [2, 8, 8], strides = [1, 1, 1]} : vector<2x8x32xf32> to vector<2x8x8xf32>
    "tpu.trace_start"() <{level = 10 : i32, message = "bqd,bkd->bqk"}> : () -> ()
    %cst_4 = arith.constant dense<0.000000e+00> : vector<2x8x8xf32>
    %13 = tpu.matmul %10, %11, %cst_4 {dimension_numbers = #tpu.dot_dimension_numbers<[2], [2], [1], [1], [0, 0, 0, 1, 1, 1], [0], [0]>} : vector<2x8x8xf32>, vector<2x8x8xf32>, vector<2x8x8xf32> -> vector<2x8x8xf32>
    "tpu.trace_stop"() : () -> ()
    %cst_5 = arith.constant dense<0xFF800000> : vector<2x8xf32>
    %14 = vector.multi_reduction <maximumf>, %13, %cst_5 [2] : vector<2x8x8xf32> to vector<2x8xf32>
    %15 = vector.shape_cast %14 : vector<2x8xf32> to vector<2x8x1xf32>
    %16 = vector.broadcast %15 : vector<2x8x1xf32> to vector<2x8x8xf32>
    %17 = arith.subf %13, %16 : vector<2x8x8xf32>
    %18 = math.exp %17 : vector<2x8x8xf32>
    %cst_6 = arith.constant dense<0.000000e+00> : vector<2x8xf32>
    %19 = vector.multi_reduction <add>, %18, %cst_6 [2] : vector<2x8x8xf32> to vector<2x8xf32>
    %20 = vector.shape_cast %19 : vector<2x8xf32> to vector<2x8x1xf32>
    %21 = tpu.reciprocal %20 {approx = true} : vector<2x8x1xf32> -> vector<2x8x1xf32>
    %22 = vector.broadcast %21 : vector<2x8x1xf32> to vector<2x8x8xf32>
    %23 = arith.mulf %18, %22 : vector<2x8x8xf32>
    %c0_7 = arith.constant 0 : index
    %c0_8 = arith.constant 0 : index
    %c0_9 = arith.constant 0 : index
    %c0_10 = arith.constant 0 : index
    %24 = vector.load %arg7[%c0_7, %c0_8, %c0_9, %c0_10] : memref<4x2x8x8xf32, #tpu.memory_space<vmem>>, vector<1x2x8x8xf32>
    %25 = vector.shape_cast %24 : vector<1x2x8x8xf32> to vector<2x8x8xf32>
    %26 = vector.shape_cast %23 : vector<2x8x8xf32> to vector<1x2x8x8xf32>
    tpu.vector_store %arg7[%c0_7, %c0_8, %c0_9, %c0_10], %26 {strides = array<i32>} : memref<4x2x8x8xf32, #tpu.memory_space<vmem>>, vector<1x2x8x8xf32>,
    "tpu.trace_start"() <{level = 10 : i32, message = "bqk,bkd->bqd"}> : () -> ()
    %cst_11 = arith.constant dense<0.000000e+00> : vector<2x8x8xf32>
    %27 = tpu.matmul %23, %12, %cst_11 {dimension_numbers = #tpu.dot_dimension_numbers<[2], [1], [1], [2], [0, 0, 0, 1, 1, 2], [0], [0]>} : vector<2x8x8xf32>, vector<2x8x8xf32>, vector<2x8x8xf32> -> vector<2x8x8xf32>
    "tpu.trace_stop"() : () -> ()
    %28 = vector.shape_cast %27 : vector<2x8x8xf32> to vector<16x8xf32>
    %c0_12 = arith.constant 0 : index
    %c0_13 = arith.constant 0 : index
    %29 = vector.load %arg3[%c0_12, %c0_13] : memref<32x32xf32, #tpu.memory_space<vmem>>, vector<8x32xf32>
    %cst_14 = arith.constant dense<0.000000e+00> : vector<16x32xf32>
    %30 = tpu.matmul %28, %29, %cst_14 {dimension_numbers = #tpu.dot_dimension_numbers<[1], [0], [0], [1], [0, 0, 1, 1], [], []>} : vector<16x8xf32>, vector<8x32xf32>, vector<16x32xf32> -> vector<16x32xf32>
    %31 = arith.addf %1, %30 : vector<16x32xf32>
    %32 = vector.extract_strided_slice %5 {offsets = [0, 0, 8], sizes = [2, 8, 8], strides = [1, 1, 1]} : vector<2x8x32xf32> to vector<2x8x8xf32>
    %33 = vector.extract_strided_slice %7 {offsets = [0, 0, 8], sizes = [2, 8, 8], strides = [1, 1, 1]} : vector<2x8x32xf32> to vector<2x8x8xf32>
    %34 = vector.extract_strided_slice %9 {offsets = [0, 0, 8], sizes = [2, 8, 8], strides = [1, 1, 1]} : vector<2x8x32xf32> to vector<2x8x8xf32>
    "tpu.trace_start"() <{level = 10 : i32, message = "bqd,bkd->bqk"}> : () -> ()
    %cst_15 = arith.constant dense<0.000000e+00> : vector<2x8x8xf32>
    %35 = tpu.matmul %32, %33, %cst_15 {dimension_numbers = #tpu.dot_dimension_numbers<[2], [2], [1], [1], [0, 0, 0, 1, 1, 1], [0], [0]>} : vector<2x8x8xf32>, vector<2x8x8xf32>, vector<2x8x8xf32> -> vector<2x8x8xf32>
    "tpu.trace_stop"() : () -> ()
    %cst_16 = arith.constant dense<0xFF800000> : vector<2x8xf32>
    %36 = vector.multi_reduction <maximumf>, %35, %cst_16 [2] : vector<2x8x8xf32> to vector<2x8xf32>
    %37 = vector.shape_cast %36 : vector<2x8xf32> to vector<2x8x1xf32>
    %38 = vector.broadcast %37 : vector<2x8x1xf32> to vector<2x8x8xf32>
    %39 = arith.subf %35, %38 : vector<2x8x8xf32>
    %40 = math.exp %39 : vector<2x8x8xf32>
    %cst_17 = arith.constant dense<0.000000e+00> : vector<2x8xf32>
    %41 = vector.multi_reduction <add>, %40, %cst_17 [2] : vector<2x8x8xf32> to vector<2x8xf32>
    %42 = vector.shape_cast %41 : vector<2x8xf32> to vector<2x8x1xf32>
    %43 = tpu.reciprocal %42 {approx = true} : vector<2x8x1xf32> -> vector<2x8x1xf32>
    %44 = vector.broadcast %43 : vector<2x8x1xf32> to vector<2x8x8xf32>
    %45 = arith.mulf %40, %44 : vector<2x8x8xf32>
    %c1 = arith.constant 1 : index
    %c0_18 = arith.constant 0 : index
    %c0_19 = arith.constant 0 : index
    %c0_20 = arith.constant 0 : index
    %46 = vector.load %arg7[%c1, %c0_18, %c0_19, %c0_20] : memref<4x2x8x8xf32, #tpu.memory_space<vmem>>, vector<1x2x8x8xf32>
    %47 = vector.shape_cast %46 : vector<1x2x8x8xf32> to vector<2x8x8xf32>
    %48 = vector.shape_cast %45 : vector<2x8x8xf32> to vector<1x2x8x8xf32>
    tpu.vector_store %arg7[%c1, %c0_18, %c0_19, %c0_20], %48 {strides = array<i32>} : memref<4x2x8x8xf32, #tpu.memory_space<vmem>>, vector<1x2x8x8xf32>,
    "tpu.trace_start"() <{level = 10 : i32, message = "bqk,bkd->bqd"}> : () -> ()
    %cst_21 = arith.constant dense<0.000000e+00> : vector<2x8x8xf32>
    %49 = tpu.matmul %45, %34, %cst_21 {dimension_numbers = #tpu.dot_dimension_numbers<[2], [1], [1], [2], [0, 0, 0, 1, 1, 2], [0], [0]>} : vector<2x8x8xf32>, vector<2x8x8xf32>, vector<2x8x8xf32> -> vector<2x8x8xf32>
    "tpu.trace_stop"() : () -> ()
    %50 = vector.shape_cast %49 : vector<2x8x8xf32> to vector<16x8xf32>
    %c8 = arith.constant 8 : index
    %c0_22 = arith.constant 0 : index
    %51 = vector.load %arg3[%c8, %c0_22] : memref<32x32xf32, #tpu.memory_space<vmem>>, vector<8x32xf32>
    %cst_23 = arith.constant dense<0.000000e+00> : vector<16x32xf32>
    %52 = tpu.matmul %50, %51, %cst_23 {dimension_numbers = #tpu.dot_dimension_numbers<[1], [0], [0], [1], [0, 0, 1, 1], [], []>} : vector<16x8xf32>, vector<8x32xf32>, vector<16x32xf32> -> vector<16x32xf32>
    %53 = arith.addf %31, %52 : vector<16x32xf32>
    %54 = vector.extract_strided_slice %5 {offsets = [0, 0, 16], sizes = [2, 8, 8], strides = [1, 1, 1]} : vector<2x8x32xf32> to vector<2x8x8xf32>
    %55 = vector.extract_strided_slice %7 {offsets = [0, 0, 16], sizes = [2, 8, 8], strides = [1, 1, 1]} : vector<2x8x32xf32> to vector<2x8x8xf32>
    %56 = vector.extract_strided_slice %9 {offsets = [0, 0, 16], sizes = [2, 8, 8], strides = [1, 1, 1]} : vector<2x8x32xf32> to vector<2x8x8xf32>
    "tpu.trace_start"() <{level = 10 : i32, message = "bqd,bkd->bqk"}> : () -> ()
    %cst_24 = arith.constant dense<0.000000e+00> : vector<2x8x8xf32>
    %57 = tpu.matmul %54, %55, %cst_24 {dimension_numbers = #tpu.dot_dimension_numbers<[2], [2], [1], [1], [0, 0, 0, 1, 1, 1], [0], [0]>} : vector<2x8x8xf32>, vector<2x8x8xf32>, vector<2x8x8xf32> -> vector<2x8x8xf32>
    "tpu.trace_stop"() : () -> ()
    %cst_25 = arith.constant dense<0xFF800000> : vector<2x8xf32>
    %58 = vector.multi_reduction <maximumf>, %57, %cst_25 [2] : vector<2x8x8xf32> to vector<2x8xf32>
    %59 = vector.shape_cast %58 : vector<2x8xf32> to vector<2x8x1xf32>
    %60 = vector.broadcast %59 : vector<2x8x1xf32> to vector<2x8x8xf32>
    %61 = arith.subf %57, %60 : vector<2x8x8xf32>
    %62 = math.exp %61 : vector<2x8x8xf32>
    %cst_26 = arith.constant dense<0.000000e+00> : vector<2x8xf32>
    %63 = vector.multi_reduction <add>, %62, %cst_26 [2] : vector<2x8x8xf32> to vector<2x8xf32>
    %64 = vector.shape_cast %63 : vector<2x8xf32> to vector<2x8x1xf32>
    %65 = tpu.reciprocal %64 {approx = true} : vector<2x8x1xf32> -> vector<2x8x1xf32>
    %66 = vector.broadcast %65 : vector<2x8x1xf32> to vector<2x8x8xf32>
    %67 = arith.mulf %62, %66 : vector<2x8x8xf32>
    %c2 = arith.constant 2 : index
    %c0_27 = arith.constant 0 : index
    %c0_28 = arith.constant 0 : index
    %c0_29 = arith.constant 0 : index
    %68 = vector.load %arg7[%c2, %c0_27, %c0_28, %c0_29] : memref<4x2x8x8xf32, #tpu.memory_space<vmem>>, vector<1x2x8x8xf32>
    %69 = vector.shape_cast %68 : vector<1x2x8x8xf32> to vector<2x8x8xf32>
    %70 = vector.shape_cast %67 : vector<2x8x8xf32> to vector<1x2x8x8xf32>
    tpu.vector_store %arg7[%c2, %c0_27, %c0_28, %c0_29], %70 {strides = array<i32>} : memref<4x2x8x8xf32, #tpu.memory_space<vmem>>, vector<1x2x8x8xf32>,
    "tpu.trace_start"() <{level = 10 : i32, message = "bqk,bkd->bqd"}> : () -> ()
    %cst_30 = arith.constant dense<0.000000e+00> : vector<2x8x8xf32>
    %71 = tpu.matmul %67, %56, %cst_30 {dimension_numbers = #tpu.dot_dimension_numbers<[2], [1], [1], [2], [0, 0, 0, 1, 1, 2], [0], [0]>} : vector<2x8x8xf32>, vector<2x8x8xf32>, vector<2x8x8xf32> -> vector<2x8x8xf32>
    "tpu.trace_stop"() : () -> ()
    %72 = vector.shape_cast %71 : vector<2x8x8xf32> to vector<16x8xf32>
    %c16 = arith.constant 16 : index
    %c0_31 = arith.constant 0 : index
    %73 = vector.load %arg3[%c16, %c0_31] : memref<32x32xf32, #tpu.memory_space<vmem>>, vector<8x32xf32>
    %cst_32 = arith.constant dense<0.000000e+00> : vector<16x32xf32>
    %74 = tpu.matmul %72, %73, %cst_32 {dimension_numbers = #tpu.dot_dimension_numbers<[1], [0], [0], [1], [0, 0, 1, 1], [], []>} : vector<16x8xf32>, vector<8x32xf32>, vector<16x32xf32> -> vector<16x32xf32>
    %75 = arith.addf %53, %74 : vector<16x32xf32>
    %76 = vector.extract_strided_slice %5 {offsets = [0, 0, 24], sizes = [2, 8, 8], strides = [1, 1, 1]} : vector<2x8x32xf32> to vector<2x8x8xf32>
    %77 = vector.extract_strided_slice %7 {offsets = [0, 0, 24], sizes = [2, 8, 8], strides = [1, 1, 1]} : vector<2x8x32xf32> to vector<2x8x8xf32>
    %78 = vector.extract_strided_slice %9 {offsets = [0, 0, 24], sizes = [2, 8, 8], strides = [1, 1, 1]} : vector<2x8x32xf32> to vector<2x8x8xf32>
    "tpu.trace_start"() <{level = 10 : i32, message = "bqd,bkd->bqk"}> : () -> ()
    %cst_33 = arith.constant dense<0.000000e+00> : vector<2x8x8xf32>
    %79 = tpu.matmul %76, %77, %cst_33 {dimension_numbers = #tpu.dot_dimension_numbers<[2], [2], [1], [1], [0, 0, 0, 1, 1, 1], [0], [0]>} : vector<2x8x8xf32>, vector<2x8x8xf32>, vector<2x8x8xf32> -> vector<2x8x8xf32>
    "tpu.trace_stop"() : () -> ()
    %cst_34 = arith.constant dense<0xFF800000> : vector<2x8xf32>
    %80 = vector.multi_reduction <maximumf>, %79, %cst_34 [2] : vector<2x8x8xf32> to vector<2x8xf32>
    %81 = vector.shape_cast %80 : vector<2x8xf32> to vector<2x8x1xf32>
    %82 = vector.broadcast %81 : vector<2x8x1xf32> to vector<2x8x8xf32>
    %83 = arith.subf %79, %82 : vector<2x8x8xf32>
    %84 = math.exp %83 : vector<2x8x8xf32>
    %cst_35 = arith.constant dense<0.000000e+00> : vector<2x8xf32>
    %85 = vector.multi_reduction <add>, %84, %cst_35 [2] : vector<2x8x8xf32> to vector<2x8xf32>
    %86 = vector.shape_cast %85 : vector<2x8xf32> to vector<2x8x1xf32>
    %87 = tpu.reciprocal %86 {approx = true} : vector<2x8x1xf32> -> vector<2x8x1xf32>
    %88 = vector.broadcast %87 : vector<2x8x1xf32> to vector<2x8x8xf32>
    %89 = arith.mulf %84, %88 : vector<2x8x8xf32>
    %c3 = arith.constant 3 : index
    %c0_36 = arith.constant 0 : index
    %c0_37 = arith.constant 0 : index
    %c0_38 = arith.constant 0 : index
    %90 = vector.load %arg7[%c3, %c0_36, %c0_37, %c0_38] : memref<4x2x8x8xf32, #tpu.memory_space<vmem>>, vector<1x2x8x8xf32>
    %91 = vector.shape_cast %90 : vector<1x2x8x8xf32> to vector<2x8x8xf32>
    %92 = vector.shape_cast %89 : vector<2x8x8xf32> to vector<1x2x8x8xf32>
    tpu.vector_store %arg7[%c3, %c0_36, %c0_37, %c0_38], %92 {strides = array<i32>} : memref<4x2x8x8xf32, #tpu.memory_space<vmem>>, vector<1x2x8x8xf32>,
    "tpu.trace_start"() <{level = 10 : i32, message = "bqk,bkd->bqd"}> : () -> ()
    %cst_39 = arith.constant dense<0.000000e+00> : vector<2x8x8xf32>
    %93 = tpu.matmul %89, %78, %cst_39 {dimension_numbers = #tpu.dot_dimension_numbers<[2], [1], [1], [2], [0, 0, 0, 1, 1, 2], [0], [0]>} : vector<2x8x8xf32>, vector<2x8x8xf32>, vector<2x8x8xf32> -> vector<2x8x8xf32>
    "tpu.trace_stop"() : () -> ()
    %94 = vector.shape_cast %93 : vector<2x8x8xf32> to vector<16x8xf32>
    %c24 = arith.constant 24 : index
    %c0_40 = arith.constant 0 : index
    %95 = vector.load %arg3[%c24, %c0_40] : memref<32x32xf32, #tpu.memory_space<vmem>>, vector<8x32xf32>
    %cst_41 = arith.constant dense<0.000000e+00> : vector<16x32xf32>
    %96 = tpu.matmul %94, %95, %cst_41 {dimension_numbers = #tpu.dot_dimension_numbers<[1], [0], [0], [1], [0, 0, 1, 1], [], []>} : vector<16x8xf32>, vector<8x32xf32>, vector<16x32xf32> -> vector<16x32xf32>
    %97 = arith.addf %75, %96 : vector<16x32xf32>
    %98 = vector.shape_cast %97 : vector<16x32xf32> to vector<2x8x32xf32>
    %c0_42 = arith.constant 0 : index
    %c0_43 = arith.constant 0 : index
    %c0_44 = arith.constant 0 : index
    %99 = vector.load %arg6[%c0_42, %c0_43, %c0_44] : memref<2x8x32xf32, #tpu.memory_space<vmem>>, vector<2x8x32xf32>
    tpu.vector_store %arg6[%c0_42, %c0_43, %c0_44], %98 {strides = array<i32>} : memref<2x8x32xf32, #tpu.memory_space<vmem>>, vector<2x8x32xf32>,
    %c0_45 = arith.constant 0 : index
    %c0_46 = arith.constant 0 : index
    %100 = vector.load %arg4[%c0_45, %c0_46] : memref<32x128xf32, #tpu.memory_space<vmem>>, vector<32x128xf32>
    %cst_47 = arith.constant dense<0.000000e+00> : vector<16x128xf32>
    %101 = tpu.matmul %97, %100, %cst_47 {dimension_numbers = #tpu.dot_dimension_numbers<[1], [0], [0], [1], [0, 0, 1, 1], [], []>} : vector<16x32xf32>, vector<32x128xf32>, vector<16x128xf32> -> vector<16x128xf32>
    %cst_48 = arith.constant 0.000000e+00 : f32
    %102 = vector.broadcast %cst_48 : f32 to vector<16x128xf32>
    %103 = arith.maximumf %101, %102 : vector<16x128xf32>
    %c0_49 = arith.constant 0 : index
    %c0_50 = arith.constant 0 : index
    %104 = vector.load %arg5[%c0_49, %c0_50] : memref<128x32xf32, #tpu.memory_space<vmem>>, vector<128x32xf32>
    %cst_51 = arith.constant dense<0.000000e+00> : vector<16x32xf32>
    %105 = tpu.matmul %103, %104, %cst_51 {dimension_numbers = #tpu.dot_dimension_numbers<[1], [0], [0], [1], [0, 0, 1, 1], [], []>} : vector<16x128xf32>, vector<128x32xf32>, vector<16x32xf32> -> vector<16x32xf32>
    %106 = vector.shape_cast %105 : vector<16x32xf32> to vector<2x8x32xf32>
    %c0_52 = arith.constant 0 : index
    %c0_53 = arith.constant 0 : index
    %c0_54 = arith.constant 0 : index
    %107 = vector.load %arg8[%c0_52, %c0_53, %c0_54] : memref<2x8x32xf32, #tpu.memory_space<vmem>>, vector<2x8x32xf32>
    tpu.vector_store %arg8[%c0_52, %c0_53, %c0_54], %106 {strides = array<i32>} : memref<2x8x32xf32, #tpu.memory_space<vmem>>, vector<2x8x32xf32>,
    return
  }
  func.func @transform_0(%arg0: i32) -> (i32, i32, i32) {
    %c0_i32 = arith.constant 0 : i32
    %c0_i32_0 = arith.constant 0 : i32
    %c0_i32_1 = arith.constant 0 : i32
    %c0_i32_2 = arith.constant 0 : i32
    return %c0_i32, %c0_i32_0, %c0_i32_1 : i32, i32, i32
  }
  func.func @transform_1(%arg0: i32) -> (i32, i32) {
    %c0_i32 = arith.constant 0 : i32
    %c0_i32_0 = arith.constant 0 : i32
    %c0_i32_1 = arith.constant 0 : i32
    return %c0_i32, %c0_i32_0 : i32, i32
  }
  func.func @transform_2(%arg0: i32) -> (i32, i32) {
    %c0_i32 = arith.constant 0 : i32
    %c0_i32_0 = arith.constant 0 : i32
    %c0_i32_1 = arith.constant 0 : i32
    return %c0_i32, %c0_i32_0 : i32, i32
  }
  func.func @transform_3(%arg0: i32) -> (i32, i32) {
    %c0_i32 = arith.constant 0 : i32
    %c0_i32_0 = arith.constant 0 : i32
    %c0_i32_1 = arith.constant 0 : i32
    return %c0_i32, %c0_i32_0 : i32, i32
  }
  func.func @transform_4(%arg0: i32) -> (i32, i32) {
    %c0_i32 = arith.constant 0 : i32
    %c0_i32_0 = arith.constant 0 : i32
    %c0_i32_1 = arith.constant 0 : i32
    return %c0_i32, %c0_i32_0 : i32, i32
  }
  func.func @transform_5(%arg0: i32) -> (i32, i32, i32) {
    %c0_i32 = arith.constant 0 : i32
    %c0_i32_0 = arith.constant 0 : i32
    %c0_i32_1 = arith.constant 0 : i32
    %c0_i32_2 = arith.constant 0 : i32
    return %c0_i32, %c0_i32_0, %c0_i32_1 : i32, i32, i32
  }
  func.func @transform_6(%arg0: i32) -> (i32, i32, i32, i32) {
    %c0_i32 = arith.constant 0 : i32
    %c0_i32_0 = arith.constant 0 : i32
    %c0_i32_1 = arith.constant 0 : i32
    %c0_i32_2 = arith.constant 0 : i32
    %c0_i32_3 = arith.constant 0 : i32
    return %c0_i32, %c0_i32_0, %c0_i32_1, %c0_i32_2 : i32, i32, i32, i32
  }
  func.func @transform_7(%arg0: i32) -> (i32, i32, i32) {
    %c0_i32 = arith.constant 0 : i32
    %c0_i32_0 = arith.constant 0 : i32
    %c0_i32_1 = arith.constant 0 : i32
    %c0_i32_2 = arith.constant 0 : i32
    return %c0_i32, %c0_i32_0, %c0_i32_1 : i32, i32, i32
  }
}

</mosaic_0001>

<bundles_post_ra>
// kernel: encoder_layer_forward.1
= control target key start
LH: loop header
LB: loop body
LE: loop exit
PB: predicated region body
PF: predicated region fallthrough
CT: control target
= control target key end

     0   :  { %13 = vsyncpa [#allocation3], 0  ;;  %s1275_s0 = inlined_call_operand.vmem [shape: f32[2,8,32], index: 0, kind: input, shape index: {}]   ;;  %s1276_s1 = inlined_call_operand.vmem [shape: f32[32,96], index: 1, kind: input, shape index: {}]   ;;  %s1277_s2 = inlined_call_operand.vmem [shape: f32[32,32], index: 2, kind: input, shape index: {}]   ;;  %s1278_s3 = inlined_call_operand.vmem [shape: f32[32,128], index: 3, kind: input, shape index: {}]   ;;  %s1279_s4 = inlined_call_operand.vmem [shape: f32[128,32], index: 4, kind: input, shape index: {}]   ;;  %s1280_s5 = inlined_call_operand.hbm [shape: f32[2,8,32], index: 5, kind: output, shape index: {0}]   ;;  %s1281_s6 = inlined_call_operand.vmem [shape: f32[4,2,8,8], index: 6, kind: output, shape index: {1}]   ;;  %s1282_s7 = inlined_call_operand.hbm [shape: f32[2,8,32], index: 7, kind: output, shape index: {2}]  }
   0x1   :  { %v30_v0 = vld [vmem:[%s1276_s1 + $0x18] sm:$0xff]  ;;  %v29_v1 = vld [vmem:[%s1276_s1 + $0x10] sm:$0xff]  ;;  %v28_v2 = vld [vmem:[%s1276_s1 + $0x8] sm:$0xff] }
   0x2   :  { %50 = vmatpush.msra.mxu0 %v30_v0 }
   0x3   :  { %14 = vsyncpa [#allocation5], 0  ;;  %v27_v3 = vld [vmem:[%s1276_s1] sm:$0xff]  ;;  %vm31_vm0 = vcmask 261120   ;;  %v1055_v5 = vld [vmem:[%s1275_s0 + $0x8] sm:$0xff]  ;;  %s978_s1 = smov 96  }
   0x4   :  { %51 = vmatpush.msra.mxu0 %v29_v1  ;;  %v1048_v4 = vld [vmem:[%s1275_s0] sm:$0xff]  ;;  %s979_s13 = smov 64   ;;  %s980_s14 = smov 120   ;;  %vm64_vm1 = vcmask 64512   ;;  %v357_v62 = vld [vmem:[%s1277_s2 + $0x8] sm:$0xff] }
   0x5   :  { %s981_s0 = smov 88   ;;  %s982_s15 = smov 112   ;;  %v192_v26 = vld [vmem:[%s1277_s2] sm:$0xff] }
   0x6   :  { %52 = vmatpush.msra.mxu0 %v28_v2  ;;  %s983_s16 = smov 80   ;;  %s984_s23 = smov 56  }
   0x7   :  { %s985_s24 = smov 72   ;;  %s986_s25 = smov 104  }
   0x8   :  { %53 = vmatpush.msra.mxu0 %v27_v3  ;;  %s987_s26 = smov 48   ;;  %s989_s8 = smov [#allocation2]  }
   0x9   :  { %837 = vmatmul.msk.f32.vlgmr.msra.gmra.mxu0 %vm31_vm0, %v1048_v4  ;;  %s801_s9 = sshll.u32 %s989_s8, 4  ;;  %s990_s12 = smov 128   ;;  %s802_s9 = int_to_ptr.vmem [resolvable:$true] %s801_s9 }
  0x11   :  { %838 = vmatmul.msk.f32.gmra.mxu0 %vm31_vm0, %v1055_v5 }
  0x86   :  { %v1059_v6 = vpop.f32.mrf.mxu0 }
  0x87   :  { %62 = vrot.lane.b32.xlu0 %v1059_v6, %s978_s1 }
  0x8e   :  { %v1062_v7 = vpop.f32.mrf.mxu0 }
  0x8f   :  { %90 = vrot.lane.b32.xlu0 %v1062_v7, %s978_s1  ;;  %s991_s1 = smov 8  }
  0x97   :  { %140 = vrot.lane.b32.xlu0 %v1059_v6, %s979_s13 }
  0x9f   :  { %224 = vrot.lane.b32.xlu0 %v1059_v6, %s980_s14 }
  0xa7   :  { %254 = vrot.lane.b32.xlu0 %v1062_v7, %s981_s0 }
  0xaf   :  { %252 = vrot.lane.b32.xlu0 %v1062_v7, %s980_s14 }
  0xf9   :  { %v63_v8 = vpop.permute.xlu0 %62 }
  0xfa   :  { %839 = vmatpush.xpose.msk.msra.mxu1 %vm64_vm1, %v63_v8 }
  0xfd   :  { %840 = vmatmul.msk.f32.vlgmr.msra.gmra.mxu1 %vm64_vm1, %v1059_v6 }
  0xfe   :  { %214 = vmatpush.msrb.mxu1 %v192_v26 }
 0x101   :  { %v91_v9 = vpop.permute.xlu0 %90 }
 0x102   :  { %841 = vmatpush.xpose.msk.msrb.mxu0 %vm64_vm1, %v91_v9 }
 0x105   :  { %842 = vmatmul.msk.f32.vlgmr.msrb.gmra.mxu0 %vm64_vm1, %v1062_v7 }
 0x109   :  { %v141_v10 = vpop.permute.xlu0 %140 }
 0x10a   :  { %161 = vmatpush.msra.mxu3 %v141_v10 }
 0x111   :  { %v225_v27 = vpop.permute.xlu0 %224 }
 0x119   :  { %v255_v32 = vpop.permute.xlu0 %254 }
 0x121   :  { %v253_v37 = vpop.permute.xlu0 %252 }
 0x17a   :  { %v86_v11 = vpop.f32.mrf.mxu1 }
 0x17b   :  { %v116_v12 = vsel %vm64_vm1, %v86_v11, -inf }
 0x17c   :  { %117 = vmax.xlane.f32.xlu1 %v116_v12 }
 0x182   :  { %v113_v13 = vpop.f32.mrf.mxu0 }
 0x183   :  { %v119_v14 = vsel %vm64_vm1, %v113_v13, -inf }
 0x184   :  { %120 = vmax.xlane.f32.xlu1 %v119_v14 }
 0x19d   :  { %166 = vrot.lane.b32.xlu1 %v1062_v7, %s979_s13  ;;  %s988_s13 = smov 40  }
 0x1a5   :  { %389 = vrot.lane.b32.xlu1 %v1059_v6, %s982_s15 }
 0x1ef   :  { %v118_v15 = vpop.xlane.xlu1 %117 }
 0x1f0   :  { %v122_v16 = vsub.f32 %v86_v11, %v118_v15 }
 0x1f2   :  { %v124_v17 = vmul.f32 1.442695, %v122_v16 }
 0x1f4   :  { %894 = vpow2.f32 %v124_v17 }
 0x1f7   :  { %v121_v18 = vpop.xlane.xlu1 %120 }
 0x1f8   :  { %v123_v19 = vsub.f32 %v113_v13, %v121_v18 }
 0x1fa   :  { %v895_v20 = vpop.eup %894  ;;  %v126_v21 = vmul.f32 1.442695, %v123_v19 }
 0x1fb   :  { %v128_v22 = vsel %vm64_vm1, %v895_v20, 0.0 }
 0x1fc   :  { %896 = vpow2.f32 %v126_v21  ;;  %129 = vadd.xlane.f32.xlu2 %v128_v22 }
 0x202   :  { %v897_v23 = vpop.eup %896 }
 0x203   :  { %v131_v24 = vsel %vm64_vm1, %v897_v23, 0.0 }
 0x204   :  { %132 = vadd.xlane.f32.xlu2 %v131_v24 }
 0x20f   :  { %v167_v25 = vpop.permute.xlu1 %166 }
 0x210   :  { %187 = vmatpush.msrb.mxu3 %v167_v25  ;;  %v522_v25 = vld [vmem:[%s1277_s2 + $0x10] sm:$0xff] }
 0x217   :  { %v390_v42 = vpop.permute.xlu1 %389 }
 0x21c   :  { %226 = vrot.lane.b32.xlu2 %v1059_v6, %s981_s0 }
 0x224   :  { %391 = vrot.lane.b32.xlu2 %v1059_v6, %s983_s16 }
 0x26f   :  { %v130_v28 = vpop.xlane.xlu2 %129 }
 0x270   :  { %898 = vrcp.f32 %v130_v28 }
 0x276   :  { %v899_v29 = vpop.eup %898 }
 0x277   :  { %v133_v30 = vpop.xlane.xlu2 %132  ;;  %v136_v31 = vmul.f32 %v899_v29, %v895_v20 }
 0x278   :  { %900 = vrcp.f32 %v133_v30 }
 0x279   :  { %138 = vst.msk [vmem:[%s1281_s6] sm:$0xff] %vm64_vm1, %v136_v31  ;;  %843 = vmatmul.msk.f32.vlgmr.msra.gmra.mxu3 %vm64_vm1, %v136_v31 }
 0x27a   :  { %849 = vmatpush.xpose.msk.msra.mxu3 %vm64_vm1, %v255_v32 }
 0x27e   :  { %v901_v33 = vpop.eup %900 }
 0x27f   :  { %v227_v34 = vpop.permute.xlu2 %226  ;;  %v137_v35 = vmul.f32 %v901_v33, %v897_v23 }
 0x280   :  { %847 = vmatpush.xpose.msk.msra.mxu0 %vm64_vm1, %v227_v34 }
 0x281   :  { %139 = vst.msk [vmem:[%s1281_s6 + $0x8] sm:$0xff] %vm64_vm1, %v137_v35  ;;  %844 = vmatmul.msk.f32.vlgmr.msrb.gmra.mxu3 %vm64_vm1, %v137_v35 }
 0x282   :  { %379 = vmatpush.msrb.mxu3 %v357_v62  ;;  %v687_v62 = vld [vmem:[%s1277_s2 + $0x18] sm:$0xff] }
 0x283   :  { %848 = vmatmul.msk.f32.vlgmr.msra.gmra.mxu0 %vm64_vm1, %v225_v27 }
 0x287   :  { %v392_v36 = vpop.permute.xlu2 %391 }
 0x288   :  { %857 = vmatpush.xpose.msk.msra.mxu1 %vm64_vm1, %v392_v36 }
 0x289   :  { %850 = vmatmul.msk.f32.vlgmr.msra.gmra.mxu3 %vm64_vm1, %v253_v37 }
 0x2fc   :  { %v163_v38 = vpop.f32.mrf.mxu3 }
 0x2fd   :  { %845 = vmatmul.msk.f32.vlgmr.msrb.gmra.mxu1 %vm64_vm1, %v163_v38 }
 0x300   :  { %v249_v39 = vpop.f32.mrf.mxu0 }
 0x301   :  { %v280_v40 = vsel %vm64_vm1, %v249_v39, -inf }
 0x302   :  { %281 = vmax.xlane.f32.xlu0 %v280_v40 }
 0x304   :  { %v189_v41 = vpop.f32.mrf.mxu3 }
 0x305   :  { %846 = vmatmul.msk.f32.gmra.mxu1 %vm64_vm1, %v189_v41 }
 0x30c   :  { %v277_v43 = vpop.f32.mrf.mxu3 }
 0x30d   :  { %858 = vmatmul.msk.f32.vlgmr.msra.gmra.mxu1 %vm64_vm1, %v390_v42  ;;  %v283_v44 = vsel %vm64_vm1, %v277_v43, -inf }
 0x30e   :  { %284 = vmax.xlane.f32.xlu2 %v283_v44 }
 0x326   :  { %305 = vrot.lane.b32.xlu2 %v1059_v6, %s984_s23 }
 0x32e   :  { %419 = vrot.lane.b32.xlu2 %v1062_v7, %s983_s16 }
 0x336   :  { %556 = vrot.lane.b32.xlu2 %v1059_v6, %s985_s24 }
 0x33e   :  { %554 = vrot.lane.b32.xlu2 %v1059_v6, %s986_s25 }
 0x375   :  { %v282_v45 = vpop.xlane.xlu0 %281 }
 0x376   :  { %v286_v46 = vsub.f32 %v249_v39, %v282_v45 }
 0x378   :  { %v288_v47 = vmul.f32 1.442695, %v286_v46 }
 0x37a   :  { %902 = vpow2.f32 %v288_v47  ;;  %v1116_v48 = vpop.f32.mrf.mxu1 }
 0x37b   :  { %v222_v26 = vadd.f32 %v1116_v48, %v1048_v4 }
 0x380   :  { %v903_v49 = vpop.eup %902 }
 0x381   :  { %v285_v50 = vpop.xlane.xlu2 %284  ;;  %v292_v51 = vsel %vm64_vm1, %v903_v49, 0.0 }
 0x382   :  { %v287_v52 = vsub.f32 %v277_v43, %v285_v50  ;;  %293 = vadd.xlane.f32.xlu1 %v292_v51  ;;  %v1119_v54 = vpop.f32.mrf.mxu1 }
 0x383   :  { %v223_v29 = vadd.f32 %v1119_v54, %v1055_v5 }
 0x384   :  { %v290_v53 = vmul.f32 1.442695, %v287_v52 }
 0x386   :  { %904 = vpow2.f32 %v290_v53 }
 0x389   :  { %v306_v55 = vpop.permute.xlu2 %305 }
 0x38a   :  { %326 = vmatpush.msra.mxu2 %v306_v55  ;;  %v414_v59 = vpop.f32.mrf.mxu1 }
 0x38b   :  { %v445_v60 = vsel %vm64_vm1, %v414_v59, -inf }
 0x38c   :  { %v905_v56 = vpop.eup %904 }
 0x38d   :  { %v295_v57 = vsel %vm64_vm1, %v905_v56, 0.0 }
 0x38e   :  { %296 = vadd.xlane.f32.xlu0 %v295_v57 }
 0x391   :  { %v420_v58 = vpop.permute.xlu2 %419 }
 0x392   :  { %859 = vmatpush.xpose.msk.msrb.mxu2 %vm64_vm1, %v420_v58 }
 0x396   :  { %446 = vmax.xlane.f32.xlu0 %v445_v60 }
 0x399   :  { %v557_v15 = vpop.permute.xlu2 %556 }
 0x39b   :  { %331 = vrot.lane.b32.xlu1 %v1062_v7, %s984_s23 }
 0x3a1   :  { %v555_v23 = vpop.permute.xlu2 %554 }
 0x3a3   :  { %470 = vrot.lane.b32.xlu1 %v1059_v6, %s987_s26 }
 0x3ab   :  { %584 = vrot.lane.b32.xlu1 %v1062_v7, %s985_s24 }
 0x3b3   :  { %582 = vrot.lane.b32.xlu1 %v1062_v7, %s986_s25 }
 0x3f5   :  { %v294_v61 = vpop.xlane.xlu1 %293 }
 0x3f6   :  { %906 = vrcp.f32 %v294_v61 }
 0x3fc   :  { %v907_v63 = vpop.eup %906 }
 0x3fd   :  { %v300_v0 = vmul.f32 %v907_v63, %v903_v49 }
 0x3ff   :  { %851 = vst.msk [vmem:[%s1281_s6 + $0x10] sm:$0xff] %vm64_vm1, %v300_v0  ;;  %853 = vmatmul.msk.f32.vlgmr.msra.gmra.mxu2 %vm64_vm1, %v300_v0 }
 0x400   :  { %544 = vmatpush.msra.mxu2 %v522_v25  ;;  %v760_v25 = vld [vmem:[%s1279_s4 + $0x20] sm:$0xff] }
 0x401   :  { %v297_v1 = vpop.xlane.xlu0 %296 }
 0x402   :  { %908 = vrcp.f32 %v297_v1 }
 0x408   :  { %v909_v2 = vpop.eup %908 }
 0x409   :  { %v301_v3 = vmul.f32 %v909_v2, %v905_v56  ;;  %v447_v8 = vpop.xlane.xlu0 %446  ;;  %v724_v2 = vld [vmem:[%s1278_s3 + $0x18] sm:$0xff] }
 0x40a   :  { %v451_v9 = vsub.f32 %v414_v59, %v447_v8  ;;  %v722_v8 = vld [vmem:[%s1278_s3 + $0x8] sm:$0xff] }
 0x40b   :  { %852 = vst.msk [vmem:[%s1281_s6 + $0x18] sm:$0xff] %vm64_vm1, %v301_v3 }
 0x40c   :  { %v453_v10 = vmul.f32 1.442695, %v451_v9  ;;  %v721_v9 = vld [vmem:[%s1278_s3] sm:$0xff] }
 0x40d   :  { %v332_v11 = vpop.permute.xlu1 %331 }
 0x40e   :  { %910 = vpow2.f32 %v453_v10  ;;  %352 = vmatpush.msrb.mxu0 %v332_v11  ;;  %v771_v10 = vld [vmem:[%s1279_s4 + $0x78] sm:$0xff]  ;;  %v770_v11 = vld [vmem:[%s1279_s4 + $0x70] sm:$0xff] }
 0x40f   :  { %854 = vmatmul.msk.f32.vlgmr.msrb.gmra.mxu0 %vm64_vm1, %v301_v3  ;;  %v723_v3 = vld [vmem:[%s1278_s3 + $0x10] sm:$0xff]  ;;  %s803_s3 = sshll.u32 %s1280_s5, 4  ;;  %s804_s3 = int_to_ptr.hbm [resolvable:$true] %s803_s3 }
 0x414   :  { %v911_v12 = vpop.eup %910 }
 0x415   :  { %v471_v13 = vpop.permute.xlu1 %470  ;;  %v457_v14 = vsel %vm64_vm1, %v911_v12, 0.0 }
 0x416   :  { %491 = vmatpush.msra.mxu0 %v471_v13  ;;  %458 = vadd.xlane.f32.xlu0 %v457_v14  ;;  %v768_v13 = vld [vmem:[%s1279_s4 + $0x60] sm:$0xff]  ;;  %v767_v14 = vld [vmem:[%s1279_s4 + $0x58] sm:$0xff] }
 0x418   :  { %867 = vmatpush.xpose.msk.msrb.mxu0 %vm64_vm1, %v557_v15  ;;  %v766_v15 = vld [vmem:[%s1279_s4 + $0x50] sm:$0xff] }
 0x41d   :  { %v585_v16 = vpop.permute.xlu1 %584 }
 0x41e   :  { %869 = vmatpush.xpose.msk.msra.mxu3 %vm64_vm1, %v585_v16  ;;  %v765_v16 = vld [vmem:[%s1279_s4 + $0x48] sm:$0xff] }
 0x425   :  { %v583_v22 = vpop.permute.xlu1 %582 }
 0x42a   :  { %417 = vrot.lane.b32.xlu0 %v1062_v7, %s982_s15  ;;  %s818_s15 = sshll.u32 %s1282_s7, 4  ;;  %s819_s15 = int_to_ptr.hbm [resolvable:$true] %s818_s15 }
 0x482   :  { %v328_v17 = vpop.f32.mrf.mxu2 }
 0x483   :  { %855 = vmatmul.msk.f32.vlgmr.msrb.gmra.mxu3 %vm64_vm1, %v328_v17  ;;  %v764_v17 = vld [vmem:[%s1279_s4 + $0x40] sm:$0xff] }
 0x484   :  { %709 = vmatpush.msrb.mxu3 %v687_v62 }
 0x489   :  { %v459_v18 = vpop.xlane.xlu0 %458 }
 0x48a   :  { %912 = vrcp.f32 %v459_v18 }
 0x48c   :  { %v354_v19 = vpop.f32.mrf.mxu0 }
 0x48d   :  { %856 = vmatmul.msk.f32.gmra.mxu3 %vm64_vm1, %v354_v19  ;;  %v763_v19 = vld [vmem:[%s1279_s4 + $0x38] sm:$0xff] }
 0x490   :  { %v913_v20 = vpop.eup %912 }
 0x491   :  { %v465_v21 = vmul.f32 %v913_v20, %v911_v12  ;;  %v769_v12 = vld [vmem:[%s1279_s4 + $0x68] sm:$0xff]  ;;  %v762_v20 = vld [vmem:[%s1279_s4 + $0x30] sm:$0xff] }
 0x493   :  { %861 = vst.msk [vmem:[%s1281_s6 + $0x20] sm:$0xff] %vm64_vm1, %v465_v21  ;;  %863 = vmatmul.msk.f32.vlgmr.msra.gmra.mxu0 %vm64_vm1, %v465_v21 }
 0x495   :  { %870 = vmatmul.msk.f32.vlgmr.msra.gmra.mxu3 %vm64_vm1, %v583_v22 }
 0x49b   :  { %868 = vmatmul.msk.f32.vlgmr.msrb.gmra.mxu0 %vm64_vm1, %v555_v23  ;;  %v761_v23 = vld [vmem:[%s1279_s4 + $0x28] sm:$0xff] }
 0x49c   :  { %v418_v24 = vpop.permute.xlu0 %417 }
 0x49d   :  { %860 = vmatmul.msk.f32.vlgmr.msrb.gmra.mxu2 %vm64_vm1, %v418_v24 }
 0x49e   :  { %772 = vmatpush.msrb.mxu2 %v771_v10 }
 0x4a0   :  { %773 = vmatpush.msrb.mxu2 %v770_v11 }
 0x4a2   :  { %774 = vmatpush.msrb.mxu2 %v769_v12 }
 0x4a4   :  { %775 = vmatpush.msrb.mxu2 %v768_v13 }
 0x4a6   :  { %776 = vmatpush.msrb.mxu2 %v767_v14 }
 0x4a8   :  { %777 = vmatpush.msrb.mxu2 %v766_v15 }
 0x4aa   :  { %778 = vmatpush.msrb.mxu2 %v765_v16 }
 0x4ac   :  { %779 = vmatpush.msrb.mxu2 %v764_v17 }
 0x4ae   :  { %780 = vmatpush.msrb.mxu2 %v763_v19 }
 0x4b0   :  { %781 = vmatpush.msrb.mxu2 %v762_v20 }
 0x4b2   :  { %782 = vmatpush.msrb.mxu2 %v761_v23 }
 0x4b4   :  { %783 = vmatpush.msrb.mxu2 %v760_v25 }
 0x506   :  { %v381_v27 = vpop.f32.mrf.mxu3 }
 0x507   :  { %v1163_v28 = vadd.f32 %v381_v27, %v222_v26  ;;  %v759_v26 = vld [vmem:[%s1279_s4 + $0x18] sm:$0xff]  ;;  %v758_v27 = vld [vmem:[%s1279_s4 + $0x10] sm:$0xff] }
 0x508   :  { %784 = vmatpush.msrb.mxu2 %v759_v26 }
 0x50a   :  { %785 = vmatpush.msrb.mxu2 %v758_v27 }
 0x510   :  { %v384_v30 = vpop.f32.mrf.mxu3  ;;  %v493_v31 = vpop.f32.mrf.mxu0 }
 0x511   :  { %v1167_v32 = vadd.f32 %v384_v30, %v223_v29  ;;  %865 = vmatmul.msk.f32.vlgmr.msra.gmra.mxu2 %vm64_vm1, %v493_v31 }
 0x518   :  { %v579_v33 = vpop.f32.mrf.mxu0  ;;  %v607_v34 = vpop.f32.mrf.mxu3 }
 0x519   :  { %v613_v35 = vsel %vm64_vm1, %v607_v34, -inf  ;;  %v610_v36 = vsel %vm64_vm1, %v579_v33, -inf }
 0x51a   :  { %614 = vmax.xlane.f32.xlu1 %v613_v35  ;;  %611 = vmax.xlane.f32.xlu2 %v610_v36 }
 0x520   :  { %v442_v4 = vpop.f32.mrf.mxu2 }
 0x521   :  { %v448_v37 = vsel %vm64_vm1, %v442_v4, -inf }
 0x522   :  { %449 = vmax.xlane.f32.xlu0 %v448_v37 }
 0x533   :  { %496 = vrot.lane.b32.xlu1 %v1062_v7, %s987_s26 }
 0x58d   :  { %v612_v5 = vpop.xlane.xlu2 %611  ;;  %v615_v40 = vpop.xlane.xlu1 %614 }
 0x58e   :  { %v616_v38 = vsub.f32 %v579_v33, %v612_v5  ;;  %v617_v43 = vsub.f32 %v607_v34, %v615_v40  ;;  %v757_v33 = vld [vmem:[%s1279_s4 + $0x8] sm:$0xff]  ;;  %v756_v34 = vld [vmem:[%s1279_s4] sm:$0xff]  ;;  %s992_s4 = smov [#allocation4]  }
 0x58f   :  { %786 = vmatpush.msrb.mxu2 %v757_v33 }
 0x590   :  { %v618_v39 = vmul.f32 1.442695, %v616_v38  ;;  %v620_v47 = vmul.f32 1.442695, %v617_v43 }
 0x591   :  { %787 = vmatpush.msrb.mxu2 %v756_v34 }
 0x592   :  { %914 = vpow2.f32 %v618_v39 }
 0x594   :  { %v546_v18 = vpop.f32.mrf.mxu2 }
 0x595   :  { %v450_v41 = vpop.xlane.xlu0 %449  ;;  %v552_v21 = vadd.f32 %v546_v18, %v1163_v28 }
 0x596   :  { %v452_v42 = vsub.f32 %v442_v4, %v450_v41 }
 0x598   :  { %v455_v44 = vmul.f32 1.442695, %v452_v42  ;;  %v915_v45 = vpop.eup %914 }
 0x599   :  { %v622_v46 = vsel %vm64_vm1, %v915_v45, 0.0 }
 0x59a   :  { %916 = vpow2.f32 %v455_v44  ;;  %623 = vadd.xlane.f32.xlu2 %v622_v46 }
 0x59b   :  { %918 = vpow2.f32 %v620_v47 }
 0x5a0   :  { %v917_v48 = vpop.eup %916 }
 0x5a1   :  { %v460_v49 = vsel %vm64_vm1, %v917_v48, 0.0  ;;  %v919_v51 = vpop.eup %918 }
 0x5a2   :  { %461 = vadd.xlane.f32.xlu0 %v460_v49  ;;  %v625_v52 = vsel %vm64_vm1, %v919_v51, 0.0 }
 0x5a5   :  { %v497_v50 = vpop.permute.xlu1 %496 }
 0x5a6   :  { %517 = vmatpush.msrb.mxu1 %v497_v50 }
 0x5aa   :  { %626 = vadd.xlane.f32.xlu0 %v625_v52 }
 0x5b2   :  { %635 = vrot.lane.b32.xlu2 %v1059_v6, %s988_s13 }
 0x5be   :  { %661 = vrot.lane.b32.xlu0 %v1062_v7, %s988_s13  ;;  %s816_s13 = sshll.u32 %s992_s4, 4  ;;  %s817_s13 = int_to_ptr.vmem [resolvable:$true] %s816_s13 }
 0x60d   :  { %v624_v53 = vpop.xlane.xlu2 %623 }
 0x60e   :  { %920 = vrcp.f32 %v624_v53 }
 0x614   :  { %v921_v54 = vpop.eup %920 }
 0x615   :  { %v462_v55 = vpop.xlane.xlu0 %461  ;;  %v630_v56 = vmul.f32 %v921_v54, %v915_v45  ;;  %v636_v57 = vpop.permute.xlu2 %635 }
 0x616   :  { %922 = vrcp.f32 %v462_v55  ;;  %656 = vmatpush.msra.mxu1 %v636_v57 }
 0x617   :  { %871 = vst.msk [vmem:[%s1281_s6 + $0x30] sm:$0xff] %vm64_vm1, %v630_v56 }
 0x61c   :  { %v923_v58 = vpop.eup %922 }
 0x61d   :  { %v466_v59 = vmul.f32 %v923_v58, %v917_v48  ;;  %v627_v60 = vpop.xlane.xlu0 %626 }
 0x61e   :  { %924 = vrcp.f32 %v627_v60 }
 0x61f   :  { %862 = vst.msk [vmem:[%s1281_s6 + $0x28] sm:$0xff] %vm64_vm1, %v466_v59  ;;  %864 = vmatmul.msk.f32.vlgmr.msrb.gmra.mxu1 %vm64_vm1, %v466_v59 }
 0x620   :  { %743 = vmatpush.msrb.mxu1 %v724_v2 }
 0x622   :  { %744 = vmatpush.msrb.mxu1 %v723_v3 }
 0x624   :  { %v925_v6 = vpop.eup %924  ;;  %745 = vmatpush.msrb.mxu1 %v722_v8 }
 0x625   :  { %v631_v7 = vmul.f32 %v925_v6, %v919_v51 }
 0x626   :  { %746 = vmatpush.msrb.mxu1 %v721_v9 }
 0x627   :  { %872 = vst.msk [vmem:[%s1281_s6 + $0x38] sm:$0xff] %vm64_vm1, %v631_v7  ;;  %873 = vmatmul.msk.f32.vlgmr.msra.gmra.mxu1 %vm64_vm1, %v630_v56 }
 0x630   :  { %v662_v61 = vpop.permute.xlu0 %661 }
 0x631   :  { %682 = vmatpush.msra.mxu0 %v662_v61 }
 0x632   :  { %874 = vmatmul.msk.f32.vlgmr.msra.gmra.mxu0 %vm64_vm1, %v631_v7 }
 0x69c   :  { %v519_v63 = vpop.f32.mrf.mxu1 }
 0x69d   :  { %866 = vmatmul.msk.f32.gmra.mxu2 %vm64_vm1, %v519_v63 }
 0x6a4   :  { %v658_v0 = vpop.f32.mrf.mxu1 }
 0x6a5   :  { %875 = vmatmul.msk.f32.vlgmr.msrb.gmra.mxu3 %vm64_vm1, %v658_v0 }
 0x6af   :  { %v684_v1 = vpop.f32.mrf.mxu0 }
 0x6b0   :  { %876 = vmatmul.msk.f32.gmra.mxu3 %vm64_vm1, %v684_v1 }
 0x720   :  { %v549_v28 = vpop.f32.mrf.mxu2 }
 0x721   :  { %v553_v29 = vadd.f32 %v549_v28, %v1167_v32 }
 0x728   :  { %v711_v22 = vpop.f32.mrf.mxu3 }
 0x729   :  { %v717_v24 = vadd.f32 %v711_v22, %v552_v21 }
 0x72b   :  { %719 = vst.msk [vmem:[#allocation2] sm:$0xff] %vm31_vm0, %v717_v24  ;;  %877 = vmatmul.msk.f32.vlgmr.msrb.gmra.mxu1 %vm31_vm0, %v717_v24 }
 0x733   :  { %v714_v30 = vpop.f32.mrf.mxu3 }
 0x734   :  { %v718_v31 = vadd.f32 %v714_v30, %v553_v29 }
 0x736   :  { %720 = vst.msk [vmem:[#allocation2 + $0x8] sm:$0xff] %vm31_vm0, %v718_v31  ;;  %878 = vmatmul.msk.f32.gmra.mxu1 %vm31_vm0, %v718_v31 }
 0x737   :  { %809 = dma.vmem_to_hbm [thread:$0]  %s802_s9, 256, %s804_s3, [#allocation3], %s990_s12, %s990_s12, %s991_s1  }
 0x7a8   :  { %v748_v35 = vpop.f32.mrf.mxu1 }
 0x7a9   :  { %v754_v36 = vmax.f32 %v748_v35, 0.0 }
 0x7ab   :  { %788 = vmatmul.f32.vlgmr.msrb.gmra.mxu2 %v754_v36 }
 0x7b3   :  { %v751_v32 = vpop.f32.mrf.mxu1 }
 0x7b4   :  { %v755_v4 = vmax.f32 %v751_v32, 0.0 }
 0x7b6   :  { %791 = vmatmul.f32.gmra.mxu2 %v755_v4 }
 0x82e   :  { %v789_v37 = vpop.f32.mrf.mxu2 }
 0x82f   :  { %795 = vst.msk [vmem:[#allocation4] sm:$0xff] %vm31_vm0, %v789_v37 }
 0x839   :  { %v792_v5 = vpop.f32.mrf.mxu2 }
 0x83a   :  { %796 = vst.msk [vmem:[#allocation4 + $0x8] sm:$0xff] %vm31_vm0, %v792_v5 }
 0x83b   :  { %824 = dma.vmem_to_hbm [thread:$0]  %s817_s13, 256, %s819_s15, [#allocation5], %s990_s12, %s990_s12, %s991_s1  }
 0x83c   :  { %974 = dma.done.wait [#allocation3], 256  }
 0x83d   :  { %975 = vsyncadd [#allocation3], 4294967040 }
 0x83e   :  { %976 = dma.done.wait [#allocation5], 256  }
 0x83f   :  { %977 = vsyncadd [#allocation5], 4294967040 }
 0x840   :  { %835 = vsyncpa [#allocation3], 1 }
 0x841   :  { %836 = vsyncpa [#allocation5], 1 }

</bundles_post_ra>
